<compile_context>
chip_gen: v7x
topology: tpu7x:2x2x1
jax: 0.10.0
libtpu: 0.0.40
codegen_flags: <defaults>
</compile_context>

<pallas_src>
import functools

import jax
import jax.numpy as jnp
from jax.experimental import pallas as pl
from jax.experimental.pallas import tpu as pltpu


def verlet_kernel(x_ref, v_ref, c_ref, x_out_ref, v_out_ref, *, time_step):
    """One fused velocity-Verlet step on a lane-dense (block_rows, 1024) tile."""
    x = x_ref[...]
    v = v_ref[...]
    c = c_ref[...]          # c = 0.5 * dt * k / m, per element

    v_half = v - c * x                  # first half-kick
    x_new = x + time_step * v_half      # drift
    v_new = v_half - c * x_new          # second half-kick (force at new positions)

    x_out_ref[...] = x_new
    v_out_ref[...] = v_new


def verlet_step(x, v, masses, *, time_step, k_spring, lane=1024, max_block_rows=512):
    """Pallas-backed equivalent of VerletIntegrator.forward(x, v)."""
    B, N, D = x.shape
    dtype = x.dtype
    total = B * N * D

    # Per-element coefficient, materialized lane-dense in the wrapper.
    c = (0.5 * float(time_step) * float(k_spring)) / masses.astype(jnp.float32)
    c = jnp.broadcast_to(c[None, :, None], (B, N, D)).astype(dtype)

    # Flatten to a lane-dense 2-D slab: last dim = `lane` (multiple of 128),
    # rows padded to a multiple of 8 (sublanes) and of the block row count.
    rows = -(-total // lane)
    rows = max(rows, 8)
    rows = ((rows + 7) // 8) * 8
    block_rows = min(max_block_rows, rows)
    rows = ((rows + block_rows - 1) // block_rows) * block_rows
    padded = rows * lane

    def flat(a):
        a = a.reshape(-1)
        return jnp.pad(a, (0, padded - total)).reshape(rows, lane)

    xf, vf, cf = flat(x), flat(v), flat(c)

    spec = pl.BlockSpec((block_rows, lane), lambda i: (i, 0))
    kernel = functools.partial(verlet_kernel, time_step=float(time_step))

    x_new_f, v_new_f = pl.pallas_call(
        kernel,
        out_shape=(
            jax.ShapeDtypeStruct((rows, lane), dtype),
            jax.ShapeDtypeStruct((rows, lane), dtype),
        ),
        grid=(rows // block_rows,),
        in_specs=[spec, spec, spec],
        out_specs=(spec, spec),
        input_output_aliases={0: 0, 1: 1},   # update x, v in place
        compiler_params=pltpu.CompilerParams(
            dimension_semantics=("parallel",),
            vmem_limit_bytes=32 * 1024 * 1024,
        ),
    )(xf, vf, cf)

    x_new = x_new_f.reshape(-1)[:total].reshape(B, N, D)
    v_new = v_new_f.reshape(-1)[:total].reshape(B, N, D)
    return x_new, v_new


def verlet_step_ref(x, v, masses, *, time_step, k_spring):
    """Pure-JAX reference mirroring the PyTorch forward exactly."""
    def force(pos):
        return -k_spring * pos
    m = masses[..., None]
    v = v + 0.5 * time_step * force(x) / m
    x = x + time_step * v
    v = v + 0.5 * time_step * force(x) / m
    return x, v


if __name__ == "__main__":
    key = jax.random.PRNGKey(0)
    kx, kv, km = jax.random.split(key, 3)

    B, N, D = 2, 8, 3            # batch, particles, spatial dims (nm)
    time_step = 0.001            # ps
    k_spring = 100.0             # kJ/mol/nm^2

    x = jax.random.normal(kx, (B, N, D), dtype=jnp.float32)
    v = jax.random.normal(kv, (B, N, D), dtype=jnp.float32)
    masses = 1.0 + jax.random.uniform(km, (N,), dtype=jnp.float32) * 11.0  # amu

    x_new, v_new = verlet_step(x, v, masses, time_step=time_step, k_spring=k_spring)
    jax.block_until_ready((x_new, v_new))

    # correctness check vs pure-JAX reference (tiny rounding diff from precomputed c = 0.5*dt*k/m)
    x_ref_out, v_ref_out = verlet_step_ref(
        x, v, masses, time_step=time_step, k_spring=k_spring
    )
    assert jnp.allclose(x_new, x_ref_out, atol=1e-6, rtol=1e-5)
    assert jnp.allclose(v_new, v_ref_out, atol=1e-6, rtol=1e-5)

    print("KERNEL_OK")
</pallas_src>

<mosaic_0001>
module attributes {stable_mosaic.version = 11 : i64} {
  func.func @verlet_kernel(%arg0: i32, %arg1: memref<8x1024xf32, #tpu.memory_space<vmem>>, %arg2: memref<8x1024xf32, #tpu.memory_space<vmem>>, %arg3: memref<8x1024xf32, #tpu.memory_space<vmem>>, %arg4: memref<8x1024xf32, #tpu.memory_space<vmem>>, %arg5: memref<8x1024xf32, #tpu.memory_space<vmem>>) attributes {dimension_semantics = [#tpu.dimension_semantics<parallel>], iteration_bounds = array<i64: 1>, scalar_prefetch = 0 : i64, scratch_operands = 0 : i64, tpu.core_type = #tpu.core_type<tc>, window_params = [{transform_indices = @transform_0, window_bounds = array<i64: 8, 1024>}, {transform_indices = @transform_1, window_bounds = array<i64: 8, 1024>}, {transform_indices = @transform_2, window_bounds = array<i64: 8, 1024>}, {transform_indices = @transform_3, window_bounds = array<i64: 8, 1024>}, {transform_indices = @transform_4, window_bounds = array<i64: 8, 1024>}]} {
    %c0 = arith.constant 0 : index
    %c0_0 = arith.constant 0 : index
    %0 = vector.load %arg1[%c0, %c0_0] : memref<8x1024xf32, #tpu.memory_space<vmem>>, vector<8x1024xf32>
    %c0_1 = arith.constant 0 : index
    %c0_2 = arith.constant 0 : index
    %1 = vector.load %arg2[%c0_1, %c0_2] : memref<8x1024xf32, #tpu.memory_space<vmem>>, vector<8x1024xf32>
    %c0_3 = arith.constant 0 : index
    %c0_4 = arith.constant 0 : index
    %2 = vector.load %arg3[%c0_3, %c0_4] : memref<8x1024xf32, #tpu.memory_space<vmem>>, vector<8x1024xf32>
    %3 = arith.mulf %2, %0 : vector<8x1024xf32>
    %4 = arith.subf %1, %3 : vector<8x1024xf32>
    %cst = arith.constant 1.000000e-03 : f32
    %5 = vector.broadcast %cst : f32 to vector<8x1024xf32>
    %6 = arith.mulf %5, %4 : vector<8x1024xf32>
    %7 = arith.addf %0, %6 : vector<8x1024xf32>
    %8 = arith.mulf %2, %7 : vector<8x1024xf32>
    %9 = arith.subf %4, %8 : vector<8x1024xf32>
    %c0_5 = arith.constant 0 : index
    %c0_6 = arith.constant 0 : index
    %10 = vector.load %arg4[%c0_5, %c0_6] : memref<8x1024xf32, #tpu.memory_space<vmem>>, vector<8x1024xf32>
    tpu.vector_store %arg4[%c0_5, %c0_6], %7 {strides = array<i32>} : memref<8x1024xf32, #tpu.memory_space<vmem>>, vector<8x1024xf32>,
    %c0_7 = arith.constant 0 : index
    %c0_8 = arith.constant 0 : index
    %11 = vector.load %arg5[%c0_7, %c0_8] : memref<8x1024xf32, #tpu.memory_space<vmem>>, vector<8x1024xf32>
    tpu.vector_store %arg5[%c0_7, %c0_8], %9 {strides = array<i32>} : memref<8x1024xf32, #tpu.memory_space<vmem>>, vector<8x1024xf32>,
    return
  }
  func.func @transform_0(%arg0: i32) -> (i32, i32) {
    %c0_i32 = arith.constant 0 : i32
    %c0_i32_0 = arith.constant 0 : i32
    return %arg0, %c0_i32 : i32, i32
  }
  func.func @transform_1(%arg0: i32) -> (i32, i32) {
    %c0_i32 = arith.constant 0 : i32
    %c0_i32_0 = arith.constant 0 : i32
    return %arg0, %c0_i32 : i32, i32
  }
  func.func @transform_2(%arg0: i32) -> (i32, i32) {
    %c0_i32 = arith.constant 0 : i32
    %c0_i32_0 = arith.constant 0 : i32
    return %arg0, %c0_i32 : i32, i32
  }
  func.func @transform_3(%arg0: i32) -> (i32, i32) {
    %c0_i32 = arith.constant 0 : i32
    %c0_i32_0 = arith.constant 0 : i32
    return %arg0, %c0_i32 : i32, i32
  }
  func.func @transform_4(%arg0: i32) -> (i32, i32) {
    %c0_i32 = arith.constant 0 : i32
    %c0_i32_0 = arith.constant 0 : i32
    return %arg0, %c0_i32 : i32, i32
  }
}

</mosaic_0001>

<bundles_post_ra>
// kernel: tpu_custom_call.1
= control target key start
LH: loop header
LB: loop body
LE: loop exit
PB: predicated region body
PF: predicated region fallthrough
CT: control target
= control target key end

     0   :  { %10 = vsyncpa [#allocation3], 0  ;;  %s361_s0 = inlined_call_operand.hbm [shape: f32[8,1024], index: 0, kind: input, shape index: {}, may-alias: {0,3}]   ;;  %s362_s1 = inlined_call_operand.hbm [shape: f32[8,1024], index: 1, kind: input, shape index: {}, may-alias: {1,4}]   ;;  %s363_s2 = inlined_call_operand.vmem [shape: f32[8,1024], index: 2, kind: input, shape index: {}]   ;;  %s364_s3 = inlined_call_operand.hbm [shape: f32[8,1024], index: 3, kind: output, shape index: {0}, may-alias: {0,3}]   ;;  %s365_s4 = inlined_call_operand.hbm [shape: f32[8,1024], index: 4, kind: output, shape index: {1}, may-alias: {1,4}]  }
   0x1   :  { %11 = vsyncpa [#allocation6], 0 }
   0x2   :  { %12 = vsyncpa [#allocation4], 0 }
   0x3   :  { %13 = vsyncpa [#allocation9], 0  ;;  %s260_s15 = smov [#allocation2]   ;;  %s261_s17 = smov [#allocation5]  }
   0x4   :  { %s20_s16 = sshll.u32 %s260_s15, 4  ;;  %s30_s18 = sshll.u32 %s261_s17, 4  ;;  %s21_s16 = int_to_ptr.vmem [resolvable:$true] %s20_s16  ;;  %s31_s18 = int_to_ptr.vmem [resolvable:$true] %s30_s18 }
   0x5   :  { %s164_s21 = scalar_lea.hbm %s361_s0, 1024 }
   0x6   :  { %p165_p0 = scmp.ne.s32.totalorder %s361_s0, %s164_s21  ;;  %p168_p1 = scmp.lt.u32.totalorder %s164_s21, %s361_s0 }
   0x8   :  { %p170_p2 = pnand %p168_p1, %p165_p0 }
   0xa   :  { %173 = shalt.err (!%p170_p2)
}
   0xb   :  { %s174_s26 = scalar_lea.vmem %s21_s16, 1024  ;;  %p179_p4 = scmp.lt.s32.totalorder %s21_s16, %s21_s16 }
   0xc   :  { %p175_p3 = scmp.ne.s32.totalorder %s21_s16, %s174_s26  ;;  %p180_p5 = scmp.lt.s32.totalorder %s174_s26, %s174_s26 }
   0xe   :  { %p181_p6 = por %p180_p5, %p179_p4 }
  0x10   :  { %p182_p7 = pnand %p181_p6, %p175_p3 }
  0x12   :  { %185 = shalt.err (!%p182_p7)
}
  0x13   :  { %23 = dma.hbm_to_vmem [thread:$0]  %s361_s0, 1024, %s21_s16, [#allocation3]  }
  0x14   :  { %s186_s5 = scalar_lea.hbm %s362_s1, 1024 }
  0x15   :  { %p187_p8 = scmp.ne.s32.totalorder %s362_s1, %s186_s5  ;;  %p190_p9 = scmp.lt.u32.totalorder %s186_s5, %s362_s1 }
  0x17   :  { %p192_p10 = pnand %p190_p9, %p187_p8 }
  0x19   :  { %195 = shalt.err (!%p192_p10)
}
  0x1a   :  { %s196_s10 = scalar_lea.vmem %s31_s18, 1024  ;;  %p201_p12 = scmp.lt.s32.totalorder %s31_s18, %s31_s18 }
  0x1b   :  { %p197_p11 = scmp.ne.s32.totalorder %s31_s18, %s196_s10  ;;  %p202_p13 = scmp.lt.s32.totalorder %s196_s10, %s196_s10 }
  0x1d   :  { %p203_p0 = por %p202_p13, %p201_p12 }
  0x1f   :  { %p204_p1 = pnand %p203_p0, %p197_p11 }
  0x21   :  { %207 = shalt.err (!%p204_p1)
}
  0x22   :  { %33 = dma.hbm_to_vmem [thread:$0]  %s362_s1, 1024, %s31_s18, [#allocation6]  }
  0x23   :  { %252 = dma.done.wait [#allocation3], 1024  }
  0x24   :  { %253 = vsyncadd [#allocation3], 4294966272 }
  0x25   :  { %254 = dma.done.wait [#allocation6], 1024  }
  0x26   :  { %255 = vsyncadd [#allocation6], 4294966272  ;;  %v42_v0 = vld [vmem:[#allocation2] sm:$0xff]  ;;  %v43_v4 = vld [vmem:[#allocation2 + $0x8] sm:$0xff]  ;;  %s263_s28 = smov [#allocation8]  }
  0x27   :  { %v50_v1 = vld [vmem:[#allocation5] sm:$0xff]  ;;  %v51_v5 = vld [vmem:[#allocation5 + $0x8] sm:$0xff]  ;;  %v44_v8 = vld [vmem:[#allocation2 + $0x10] sm:$0xff]  ;;  %s146_s29 = sshll.u32 %s263_s28, 4  ;;  %s147_s29 = int_to_ptr.vmem [resolvable:$true] %s146_s29 }
  0x28   :  { %v58_v2 = vld [vmem:[%s363_s2] sm:$0xff]  ;;  %v59_v6 = vld [vmem:[%s363_s2 + $0x8] sm:$0xff]  ;;  %v52_v9 = vld [vmem:[#allocation5 + $0x10] sm:$0xff] }
  0x29   :  { %v66_v3 = vmul.f32 %v58_v2, %v42_v0  ;;  %v67_v7 = vmul.f32 %v59_v6, %v43_v4  ;;  %v60_v10 = vld [vmem:[%s363_s2 + $0x10] sm:$0xff]  ;;  %v45_v13 = vld [vmem:[#allocation2 + $0x18] sm:$0xff]  ;;  %v46_v18 = vld [vmem:[#allocation2 + $0x20] sm:$0xff] }
  0x2a   :  { %v68_v12 = vmul.f32 %v60_v10, %v44_v8  ;;  %v53_v14 = vld [vmem:[#allocation5 + $0x18] sm:$0xff]  ;;  %v54_v19 = vld [vmem:[#allocation5 + $0x20] sm:$0xff]  ;;  %v47_v24 = vld [vmem:[#allocation2 + $0x28] sm:$0xff] }
  0x2b   :  { %v74_v11 = vsub.f32 %v50_v1, %v66_v3  ;;  %v61_v15 = vld [vmem:[%s363_s2 + $0x18] sm:$0xff]  ;;  %v75_v16 = vsub.f32 %v51_v5, %v67_v7  ;;  %v62_v20 = vld [vmem:[%s363_s2 + $0x20] sm:$0xff]  ;;  %v55_v25 = vld [vmem:[#allocation5 + $0x28] sm:$0xff] }
  0x2c   :  { %v69_v17 = vmul.f32 %v61_v15, %v45_v13  ;;  %v76_v22 = vsub.f32 %v52_v9, %v68_v12  ;;  %v70_v23 = vmul.f32 %v62_v20, %v46_v18  ;;  %v63_v26 = vld [vmem:[%s363_s2 + $0x28] sm:$0xff]  ;;  %v48_v30 = vld [vmem:[#allocation2 + $0x30] sm:$0xff]  ;;  %v49_v37 = vld [vmem:[#allocation2 + $0x38] sm:$0xff] }
  0x2d   :  { %v82_v21 = vmul.f32 0.001, %v74_v11  ;;  %v83_v27 = vmul.f32 0.001, %v75_v16  ;;  %v71_v29 = vmul.f32 %v63_v26, %v47_v24  ;;  %v56_v31 = vld [vmem:[#allocation5 + $0x30] sm:$0xff]  ;;  %v57_v38 = vld [vmem:[#allocation5 + $0x38] sm:$0xff] }
  0x2e   :  { %v77_v28 = vsub.f32 %v53_v14, %v69_v17  ;;  %v64_v32 = vld [vmem:[%s363_s2 + $0x30] sm:$0xff]  ;;  %v84_v34 = vmul.f32 0.001, %v76_v22  ;;  %v78_v35 = vsub.f32 %v54_v19, %v70_v23  ;;  %v65_v39 = vld [vmem:[%s363_s2 + $0x38] sm:$0xff]  ;;  %s262_s2 = smov [#allocation7]  }
  0x2f   :  { %v90_v33 = vadd.f32 %v82_v21, %v42_v0  ;;  %v72_v36 = vmul.f32 %v64_v32, %v48_v30  ;;  %v91_v40 = vadd.f32 %v83_v27, %v43_v4  ;;  %v79_v42 = vsub.f32 %v55_v25, %v71_v29  ;;  %s136_s27 = sshll.u32 %s262_s2, 4  ;;  %s137_s27 = int_to_ptr.vmem [resolvable:$true] %s136_s27 }
  0x30   :  { %v85_v41 = vmul.f32 0.001, %v77_v28  ;;  %v73_v43 = vmul.f32 %v65_v39, %v49_v37  ;;  %v92_v44 = vadd.f32 %v84_v34, %v44_v8  ;;  %v86_v45 = vmul.f32 0.001, %v78_v35  ;;  %s208_s30 = scalar_lea.vmem %s137_s27, 1024  ;;  %p213_p3 = scmp.lt.s32.totalorder %s137_s27, %s137_s27 }
  0x31   :  { %114 = vst [vmem:[#allocation7] sm:$0xff] %v90_v33  ;;  %v80_v46 = vsub.f32 %v56_v31, %v72_v36  ;;  %v98_v47 = vmul.f32 %v90_v33, %v58_v2  ;;  %115 = vst [vmem:[#allocation7 + $0x8] sm:$0xff] %v91_v40  ;;  %v87_v49 = vmul.f32 0.001, %v79_v42  ;;  %v99_v51 = vmul.f32 %v91_v40, %v59_v6  ;;  %p209_p2 = scmp.ne.s32.totalorder %s137_s27, %s208_s30  ;;  %p214_p4 = scmp.lt.s32.totalorder %s208_s30, %s208_s30 }
  0x32   :  { %v93_v48 = vadd.f32 %v85_v41, %v45_v13  ;;  %v81_v50 = vsub.f32 %v57_v38, %v73_v43  ;;  %116 = vst [vmem:[#allocation7 + $0x10] sm:$0xff] %v92_v44  ;;  %v94_v52 = vadd.f32 %v86_v45, %v46_v18  ;;  %v100_v55 = vmul.f32 %v92_v44, %v60_v10 }
  0x33   :  { %v88_v53 = vmul.f32 0.001, %v80_v46  ;;  %v106_v54 = vsub.f32 %v74_v11, %v98_v47  ;;  %v95_v56 = vadd.f32 %v87_v49, %v47_v24  ;;  %v107_v58 = vsub.f32 %v75_v16, %v99_v51  ;;  %p215_p5 = por %p214_p4, %p213_p3 }
  0x34   :  { %117 = vst [vmem:[#allocation7 + $0x18] sm:$0xff] %v93_v48  ;;  %v89_v57 = vmul.f32 0.001, %v81_v50  ;;  %v101_v59 = vmul.f32 %v93_v48, %v61_v15  ;;  %118 = vst [vmem:[#allocation7 + $0x20] sm:$0xff] %v94_v52  ;;  %v108_v61 = vsub.f32 %v76_v22, %v100_v55  ;;  %v102_v62 = vmul.f32 %v94_v52, %v62_v20 }
  0x35   :  { %v96_v60 = vadd.f32 %v88_v53, %v48_v30  ;;  %122 = vst [vmem:[#allocation8] sm:$0xff] %v106_v54  ;;  %119 = vst [vmem:[#allocation7 + $0x28] sm:$0xff] %v95_v56  ;;  %v103_v1 = vmul.f32 %v95_v56, %v63_v26  ;;  %p216_p6 = pnand %p215_p5, %p209_p2 }
  0x36   :  { %v97_v63 = vadd.f32 %v89_v57, %v49_v37  ;;  %123 = vst [vmem:[#allocation8 + $0x8] sm:$0xff] %v107_v58  ;;  %v109_v0 = vsub.f32 %v77_v28, %v101_v59  ;;  %124 = vst [vmem:[#allocation8 + $0x10] sm:$0xff] %v108_v61  ;;  %v110_v2 = vsub.f32 %v78_v35, %v102_v62 }
  0x37   :  { %120 = vst [vmem:[#allocation7 + $0x30] sm:$0xff] %v96_v60  ;;  %v104_v3 = vmul.f32 %v96_v60, %v64_v32  ;;  %v111_v4 = vsub.f32 %v79_v42, %v103_v1 }
  0x38   :  { %121 = vst [vmem:[#allocation7 + $0x38] sm:$0xff] %v97_v63  ;;  %125 = vst [vmem:[#allocation8 + $0x18] sm:$0xff] %v109_v0  ;;  %v105_v5 = vmul.f32 %v97_v63, %v65_v39 }
  0x39   :  { %126 = vst [vmem:[#allocation8 + $0x20] sm:$0xff] %v110_v2  ;;  %v112_v6 = vsub.f32 %v80_v46, %v104_v3 }
  0x3a   :  { %219 = shalt.err (!%p216_p6)
}
  0x3b   :  { %s220_s7 = scalar_lea.hbm %s364_s3, 1024 }
  0x3c   :  { %p221_p7 = scmp.ne.s32.totalorder %s364_s3, %s220_s7  ;;  %p224_p8 = scmp.lt.u32.totalorder %s220_s7, %s364_s3 }
  0x3e   :  { %p226_p9 = pnand %p224_p8, %p221_p7 }
  0x40   :  { %229 = shalt.err (!%p226_p9)
}
  0x41   :  { %139 = dma.vmem_to_hbm [thread:$0]  %s137_s27, 1024, %s364_s3, [#allocation4]   ;;  %127 = vst [vmem:[#allocation8 + $0x28] sm:$0xff] %v111_v4  ;;  %v113_v7 = vsub.f32 %v81_v50, %v105_v5  ;;  %128 = vst [vmem:[#allocation8 + $0x30] sm:$0xff] %v112_v6 }
  0x42   :  { %s230_s13 = scalar_lea.vmem %s147_s29, 1024  ;;  %p235_p11 = scmp.lt.s32.totalorder %s147_s29, %s147_s29 }
  0x43   :  { %129 = vst [vmem:[#allocation8 + $0x38] sm:$0xff] %v113_v7  ;;  %p231_p10 = scmp.ne.s32.totalorder %s147_s29, %s230_s13  ;;  %p236_p12 = scmp.lt.s32.totalorder %s230_s13, %s230_s13 }
  0x45   :  { %p237_p13 = por %p236_p12, %p235_p11 }
  0x47   :  { %p238_p0 = pnand %p237_p13, %p231_p10 }
  0x49   :  { %241 = shalt.err (!%p238_p0)
}
  0x4a   :  { %s242_s1 = scalar_lea.hbm %s365_s4, 1024 }
  0x4b   :  { %p243_p1 = scmp.ne.s32.totalorder %s365_s4, %s242_s1  ;;  %p246_p2 = scmp.lt.u32.totalorder %s242_s1, %s365_s4 }
  0x4d   :  { %p248_p3 = pnand %p246_p2, %p243_p1 }
  0x4f   :  { %251 = shalt.err (!%p248_p3)
}
  0x50   :  { %149 = dma.vmem_to_hbm [thread:$0]  %s147_s29, 1024, %s365_s4, [#allocation9]  }
  0x51   :  { %256 = dma.done.wait [#allocation4], 1024  }
  0x52   :  { %257 = vsyncadd [#allocation4], 4294966272 }
  0x53   :  { %258 = dma.done.wait [#allocation9], 1024  }
  0x54   :  { %259 = vsyncadd [#allocation9], 4294966272 }
  0x55   :  { %156 = vsyncpa [#allocation3], 1 }
  0x56   :  { %157 = vsyncpa [#allocation6], 1 }
  0x57   :  { %158 = vsyncpa [#allocation4], 1 }
  0x58   :  { %159 = vsyncpa [#allocation9], 1 }

</bundles_post_ra>
